<compile_context>
chip_gen: v7x
topology: tpu7x:2x2x1
jax: 0.10.0
libtpu: 0.0.40
codegen_flags: <defaults>
</compile_context>

<pallas_src>
import jax
import jax.numpy as jnp
from jax import lax
from jax.experimental import pallas as pl
from jax.experimental.pallas import tpu as pltpu


# ---------------------------------------------------------------------------
# Fused per-block kernel:
#   masked_avgpool + rels_out + entity_heads/tails_out + hidden_fuse
# ---------------------------------------------------------------------------
def _make_rel_entity_kernel(fuse_weights, seq_len, b_blk):
    """Build the fused kernel for one (B_blk, S, H) batch block.

    Per grid step the kernel sees:
      mask_ref   : (B_blk, 1, S)  int32   attention mask rows
      last_ref   : (B_blk, S, H)  bf16    last_hidden_state block
      fuse_refs  : K x (B_blk, S, H) bf16 selected encoder hidden states
      wrelT_ref  : (R, H)  f32            rels_out weight, transposed
      brel_ref   : (1, R)  f32
      whtT_ref   : (4, H)  f32            [heads_w | tails_w], transposed
      bht_ref    : (4, 1)  f32
    and writes:
      pool_ref   : (B_blk, 1, H)  f32     masked-avgpool pooler output
      rels_ref   : (B_blk, 1, R)  f32     pred_rels
      ht_ref     : (B_blk, 4, S)  f32     lane-dense [heads | tails]
      fused_ref  : (B_blk, S, H)  bf16    weighted layer fusion
    """
    K = len(fuse_weights)
    inv_s = float(1.0 / seq_len)

    def kernel(*refs):
        mask_ref, last_ref = refs[0], refs[1]
        fuse_refs = refs[2:2 + K]
        wrelT_ref, brel_ref, whtT_ref, bht_ref = refs[2 + K:6 + K]
        pool_ref, rels_ref, ht_ref, fused_ref = refs[6 + K:]

        wrel_T = wrelT_ref[...]                                  # (R, H)
        wht_T = whtT_ref[...]                                    # (4, H)
        brel = brel_ref[...]                                     # (1, R)
        bht = bht_ref[...]                                       # (4, 1)

        # Per-row heads (B_blk is small and static -> unrolled).
        for b in range(b_blk):
            last_b = last_ref[b].astype(jnp.float32)             # (S, H) f32

            # masked_avgpool: mask/count (== softmax of masked_fill for 0/1 masks)
            mask_b = (mask_ref[b] != 0).astype(jnp.float32)      # (1, S)
            count = jnp.sum(mask_b, axis=-1, keepdims=True)      # (1, 1)
            score = jnp.where(count > 0.0,
                              mask_b / jnp.maximum(count, 1.0),
                              jnp.float32(inv_s))                # (1, S)

            # Pooler on the MXU: (1,S) @ (S,H) -> (1,H)
            pooler = jnp.dot(score, last_b,
                             preferred_element_type=jnp.float32)
            pool_ref[b] = pooler

            # pred_rels: (1,H) x (R,H)^T -> (1,R)
            rels_ref[b] = lax.dot_general(
                pooler, wrel_T, (((1,), (1,)), ((), ())),
                preferred_element_type=jnp.float32) + brel

            # heads|tails, lane-dense: (4,H) x (S,H)^T -> (4,S)
            ht_ref[b] = lax.dot_general(
                wht_T, last_b, (((1,), (1,)), ((), ())),
                preferred_element_type=jnp.float32) + bht

        # hidden_fuse: weighted sum of the selected encoder layers over the
        # whole (B_blk,S,H) block.  Static weights baked in as constants.
        acc = fuse_refs[0][...].astype(jnp.float32) * fuse_weights[0]
        for k in range(1, K):
            acc = acc + fuse_refs[k][...].astype(jnp.float32) * fuse_weights[k]
        fused_ref[...] = acc.astype(fused_ref.dtype)

    return kernel


def rel_entity_forward(last_hidden_state, attention_masks, all_hidden_states,
                       fuse_layers, fuse_weights, params):
    """args.avg_pool=True / args.hidden_fuse=True path of RelEntityModel.forward.

    Activations (last_hidden_state, all_hidden_states) may be bf16; heads are
    computed in f32, the fused hidden-state output keeps the activation dtype.

    Returns (pred_rels, pred_entity_heads, pred_entity_tails,
             fused_last_hidden_state, pooler_output).
    """
    B, S, H = last_hidden_state.shape
    act_dtype = last_hidden_state.dtype
    act_bytes = jnp.dtype(act_dtype).itemsize
    R = params["w_rel"].shape[1]
    K = len(fuse_layers)
    fuse_inputs = [all_hidden_states[i].astype(act_dtype) for i in fuse_layers]

    # Transposed, lane-dense (along H) weights; heads/tails fused into one.
    w_rel_T = jnp.asarray(params["w_rel"], jnp.float32).T                 # (R, H)
    b_rel = jnp.asarray(params["b_rel"], jnp.float32).reshape(1, R)       # (1, R)
    w_ht_T = jnp.concatenate([params["w_h"], params["w_t"]],
                             axis=1).T.astype(jnp.float32)                # (4, H)
    b_ht = jnp.concatenate([params["b_h"], params["b_t"]],
                           axis=1).reshape(4, 1).astype(jnp.float32)      # (4, 1)

    mask3 = attention_masks.reshape(B, 1, S).astype(jnp.int32)

    # ---- Block-size selection: move a few MiB per grid step -----------------
    row_act_bytes = (K + 2) * S * H * act_bytes        # K+1 inputs + fused out
    row_misc_bytes = S * 4 + 4 * S * 4 + (H + R + 4) * 4
    row_bytes = row_act_bytes + row_misc_bytes
    target_step_bytes = 2 << 20
    b_blk = int(max(1, min(B, target_step_bytes // max(row_bytes, 1))))
    # v7x megacore: keep at least two parallel grid steps when each row already
    # moves >= 1 MiB (for tiny rows, one big step beats per-step overhead).
    if B >= 2 and row_bytes >= (1 << 20):
        b_blk = min(b_blk, max(1, B // 2))
    while B % b_blk:                                    # uniform blocks
        b_blk -= 1
    n_steps = B // b_blk

    # ---- VMEM budget derived from actual block bytes (cap for v7x 64 MiB) ---
    step_bytes = b_blk * row_bytes
    f32_temp_bytes = 3 * b_blk * S * H * 4              # in-kernel f32 upcasts
    weight_bytes = ((R + 4 + 2) * max(H, 128) + 2 * 8 * 128) * 4
    vmem_budget = 2 * 2 * step_bytes + f32_temp_bytes + weight_bytes + (2 << 20)
    vmem_budget = int(min(max(vmem_budget, 8 << 20), 48 << 20))

    act_spec = pl.BlockSpec((b_blk, S, H), lambda i: (i, 0, 0))
    const2 = lambda i: (0, 0)                           # grid-invariant weights
    in_specs = (
        [pl.BlockSpec((b_blk, 1, S), lambda i: (i, 0, 0)),   # attention mask
         act_spec]                                           # last_hidden_state
        + [act_spec] * K                                     # fuse layers
        + [pl.BlockSpec((R, H), const2),                     # w_rel^T
           pl.BlockSpec((1, R), const2),                     # b_rel
           pl.BlockSpec((4, H), const2),                     # w_ht^T
           pl.BlockSpec((4, 1), const2)]                     # b_ht
    )
    out_specs = (
        pl.BlockSpec((b_blk, 1, H), lambda i: (i, 0, 0)),    # pooler
        pl.BlockSpec((b_blk, 1, R), lambda i: (i, 0, 0)),    # pred_rels
        pl.BlockSpec((b_blk, 4, S), lambda i: (i, 0, 0)),    # [heads|tails] (4,S)
        act_spec,                                            # fused hidden
    )
    out_shape = (
        jax.ShapeDtypeStruct((B, 1, H), jnp.float32),
        jax.ShapeDtypeStruct((B, 1, R), jnp.float32),
        jax.ShapeDtypeStruct((B, 4, S), jnp.float32),
        jax.ShapeDtypeStruct((B, S, H), act_dtype),
    )

    kernel = _make_rel_entity_kernel(
        tuple(float(w) for w in fuse_weights), S, b_blk)

    pool, rels, ht, fused = pl.pallas_call(
        kernel,
        grid=(n_steps,),
        in_specs=in_specs,
        out_specs=out_specs,
        out_shape=out_shape,
        compiler_params=pltpu.CompilerParams(
            dimension_semantics=("parallel",),
            vmem_limit_bytes=vmem_budget,
        ),
    )(mask3, last_hidden_state, *fuse_inputs, w_rel_T, b_rel, w_ht_T, b_ht)

    pooler_output = pool[:, 0, :]
    pred_rels = rels[:, 0, :]
    pred_entity_heads = jnp.transpose(ht[:, 0:2, :], (0, 2, 1))   # (B, S, 2)
    pred_entity_tails = jnp.transpose(ht[:, 2:4, :], (0, 2, 1))   # (B, S, 2)
    return (pred_rels, pred_entity_heads, pred_entity_tails,
            fused, pooler_output)


if __name__ == "__main__":
    # Small shapes consistent with the module's forward.
    B, S, H = 2, 8, 32          # batch, seq_len, hidden_size
    VOCAB, R = 50, 4            # vocab size, args.relation_number
    N_LAYERS = 4                # synthetic encoder layers

    key = jax.random.PRNGKey(0)
    keys = jax.random.split(key, 12)

    # Module inputs: input_ids, attention_masks, token_type_ids.
    input_ids = jax.random.randint(keys[0], (B, S), 0, VOCAB, dtype=jnp.int32)
    lengths = jnp.array([S, S - 3], dtype=jnp.int32)
    attention_masks = (jnp.arange(S)[None, :] < lengths[:, None]).astype(jnp.int32)
    token_type_ids = jnp.zeros((B, S), dtype=jnp.int32)

    # TODO(synk): BertModel.from_pretrained cannot be loaded; stand in with a
    # deterministic synthetic encoder (embeddings + per-layer linear+tanh) that
    # produces last_hidden_state and all hidden states with BERT-like shapes.
    tok_emb = 0.02 * jax.random.normal(keys[1], (VOCAB, H), jnp.float32)
    typ_emb = 0.02 * jax.random.normal(keys[2], (2, H), jnp.float32)
    pos_emb = 0.02 * jax.random.normal(keys[3], (S, H), jnp.float32)
    h = tok_emb[input_ids] + typ_emb[token_type_ids] + pos_emb[None, :, :]
    all_hidden_states = [h]
    for li in range(N_LAYERS):
        wl = jax.random.normal(jax.random.fold_in(keys[4], li), (H, H),
                               jnp.float32) / jnp.sqrt(H)
        h = jnp.tanh(h @ wl)
        all_hidden_states.append(h)
    last_hidden_state = all_hidden_states[-1]

    # Head parameters (PyTorch Linear(H, out) weights, transposed to [H, out]).
    # Rounded to bf16-representable f32 values so the reference (default-
    # precision XLA matmul) and the kernel agree tightly regardless of how each
    # backend splits f32 matmuls.
    def bf16_repr(x):
        return x.astype(jnp.bfloat16).astype(jnp.float32)

    params = dict(
        w_rel=bf16_repr(0.02 * jax.random.normal(keys[5], (H, R), jnp.float32)),
        b_rel=bf16_repr(0.02 * jax.random.normal(keys[6], (1, R), jnp.float32)),
        w_h=bf16_repr(0.02 * jax.random.normal(keys[7], (H, 2), jnp.float32)),
        b_h=bf16_repr(0.02 * jax.random.normal(keys[8], (1, 2), jnp.float32)),
        w_t=bf16_repr(0.02 * jax.random.normal(keys[9], (H, 2), jnp.float32)),
        b_t=bf16_repr(0.02 * jax.random.normal(keys[10], (1, 2), jnp.float32)),
    )

    # args.avg_pool=True, args.hidden_fuse=True
    fuse_layers = (1, 2, 3)                 # args.hidden_fuse_layers
    fuse_weights = (0.2, 0.3, 0.5)          # args.fuse_layers_weights

    # Carry activations in bf16 (the HBM-bandwidth lever).
    last_bf16 = last_hidden_state.astype(jnp.bfloat16)
    hidden_bf16 = [hs.astype(jnp.bfloat16) for hs in all_hidden_states]

    outs = rel_entity_forward(last_bf16, attention_masks, hidden_bf16,
                              fuse_layers, fuse_weights, params)
    outs = jax.block_until_ready(outs)
    pred_rels, pred_heads, pred_tails, fused_last_hidden, pooler_output = outs

    # Plain-JAX reference check (mirrors the PyTorch forward), built from the
    # same bf16-valued activations the kernel consumed.
    last_f = last_bf16.astype(jnp.float32)
    mask_f = jnp.where(attention_masks == 0, jnp.float32(-1e9),
                       attention_masks.astype(jnp.float32))
    score_ref = jax.nn.softmax(mask_f, axis=-1)
    pooler_ref = jnp.einsum("bs,bsh->bh", score_ref, last_f)
    rels_ref = pooler_ref @ params["w_rel"] + params["b_rel"]
    heads_ref = last_f @ params["w_h"] + params["b_h"][None]
    tails_ref = last_f @ params["w_t"] + params["b_t"][None]
    fused_ref = sum(w * hidden_bf16[i].astype(jnp.float32)
                    for i, w in zip(fuse_layers, fuse_weights))

    assert jnp.allclose(pred_heads, heads_ref, atol=1e-4, rtol=1e-4)
    assert jnp.allclose(pred_tails, tails_ref, atol=1e-4, rtol=1e-4)
    assert jnp.allclose(pooler_output, pooler_ref, atol=5e-3, rtol=5e-3)
    assert jnp.allclose(pred_rels, rels_ref, atol=5e-3, rtol=5e-3)
    assert jnp.allclose(fused_last_hidden.astype(jnp.float32), fused_ref,
                        atol=2e-2, rtol=2e-2)

    print("KERNEL_OK")
</pallas_src>

<mosaic_0001>
module attributes {stable_mosaic.version = 11 : i64} {
  func.func @kernel(%arg0: i32, %arg1: memref<2x1x8xi32, #tpu.memory_space<vmem>>, %arg2: memref<2x8x32xbf16, #tpu.memory_space<vmem>>, %arg3: memref<2x8x32xbf16, #tpu.memory_space<vmem>>, %arg4: memref<2x8x32xbf16, #tpu.memory_space<vmem>>, %arg5: memref<2x8x32xbf16, #tpu.memory_space<vmem>>, %arg6: memref<4x32xf32, #tpu.memory_space<vmem>>, %arg7: memref<1x4xf32, #tpu.memory_space<vmem>>, %arg8: memref<4x32xf32, #tpu.memory_space<vmem>>, %arg9: memref<4x1xf32, #tpu.memory_space<vmem>>, %arg10: memref<2x1x32xf32, #tpu.memory_space<vmem>>, %arg11: memref<2x1x4xf32, #tpu.memory_space<vmem>>, %arg12: memref<2x4x8xf32, #tpu.memory_space<vmem>>, %arg13: memref<2x8x32xbf16, #tpu.memory_space<vmem>>) attributes {dimension_semantics = [#tpu.dimension_semantics<parallel>], iteration_bounds = array<i64: 1>, scalar_prefetch = 0 : i64, scratch_operands = 0 : i64, tpu.core_type = #tpu.core_type<tc>, window_params = [{transform_indices = @transform_0, window_bounds = array<i64: 2, 1, 8>}, {transform_indices = @transform_1, window_bounds = array<i64: 2, 8, 32>}, {transform_indices = @transform_2, window_bounds = array<i64: 2, 8, 32>}, {transform_indices = @transform_3, window_bounds = array<i64: 2, 8, 32>}, {transform_indices = @transform_4, window_bounds = array<i64: 2, 8, 32>}, {pipeline_mode = #tpu.pipeline_mode<synchronous>, transform_indices = @transform_5, window_bounds = array<i64: 4, 32>}, {pipeline_mode = #tpu.pipeline_mode<synchronous>, transform_indices = @transform_6, window_bounds = array<i64: 1, 4>}, {pipeline_mode = #tpu.pipeline_mode<synchronous>, transform_indices = @transform_7, window_bounds = array<i64: 4, 32>}, {pipeline_mode = #tpu.pipeline_mode<synchronous>, transform_indices = @transform_8, window_bounds = array<i64: 4, 1>}, {transform_indices = @transform_9, window_bounds = array<i64: 2, 1, 32>}, {transform_indices = @transform_10, window_bounds = array<i64: 2, 1, 4>}, {transform_indices = @transform_11, window_bounds = array<i64: 2, 4, 8>}, {transform_indices = @transform_12, window_bounds = array<i64: 2, 8, 32>}]} {
    %c0 = arith.constant 0 : index
    %c0_0 = arith.constant 0 : index
    %0 = vector.load %arg6[%c0, %c0_0] : memref<4x32xf32, #tpu.memory_space<vmem>>, vector<4x32xf32>
    %c0_1 = arith.constant 0 : index
    %c0_2 = arith.constant 0 : index
    %1 = vector.load %arg8[%c0_1, %c0_2] : memref<4x32xf32, #tpu.memory_space<vmem>>, vector<4x32xf32>
    %c0_3 = arith.constant 0 : index
    %c0_4 = arith.constant 0 : index
    %2 = vector.load %arg7[%c0_3, %c0_4] : memref<1x4xf32, #tpu.memory_space<vmem>>, vector<1x4xf32>
    %c0_5 = arith.constant 0 : index
    %c0_6 = arith.constant 0 : index
    %3 = vector.load %arg9[%c0_5, %c0_6] : memref<4x1xf32, #tpu.memory_space<vmem>>, vector<4x1xf32>
    %c0_7 = arith.constant 0 : index
    %c0_8 = arith.constant 0 : index
    %c0_9 = arith.constant 0 : index
    %4 = vector.load %arg2[%c0_7, %c0_8, %c0_9] : memref<2x8x32xbf16, #tpu.memory_space<vmem>>, vector<1x8x32xbf16>
    %5 = vector.shape_cast %4 : vector<1x8x32xbf16> to vector<8x32xbf16>
    %6 = arith.extf %5 : vector<8x32xbf16> to vector<8x32xf32>
    %c0_10 = arith.constant 0 : index
    %c0_11 = arith.constant 0 : index
    %c0_12 = arith.constant 0 : index
    %7 = vector.load %arg1[%c0_10, %c0_11, %c0_12] : memref<2x1x8xi32, #tpu.memory_space<vmem>>, vector<1x1x8xi32>
    %8 = vector.shape_cast %7 : vector<1x1x8xi32> to vector<1x8xi32>
    %c0_i32 = arith.constant 0 : i32
    %9 = vector.broadcast %c0_i32 : i32 to vector<1x8xi32>
    %10 = arith.cmpi ne, %8, %9 : vector<1x8xi32>
    %11 = arith.extui %10 : vector<1x8xi1> to vector<1x8xi32>
    %12 = arith.sitofp %11 : vector<1x8xi32> to vector<1x8xf32>
    %cst = arith.constant dense<0.000000e+00> : vector<1xf32>
    %13 = vector.multi_reduction <add>, %12, %cst [1] : vector<1x8xf32> to vector<1xf32>
    %14 = vector.shape_cast %13 : vector<1xf32> to vector<1x1xf32>
    %cst_13 = arith.constant 0.000000e+00 : f32
    %15 = vector.broadcast %cst_13 : f32 to vector<1x1xf32>
    %16 = arith.cmpf ogt, %14, %15 : vector<1x1xf32>
    %cst_14 = arith.constant 1.000000e+00 : f32
    %17 = vector.broadcast %cst_14 : f32 to vector<1x1xf32>
    %18 = arith.maximumf %14, %17 : vector<1x1xf32>
    %19 = vector.broadcast %18 : vector<1x1xf32> to vector<1x8xf32>
    %20 = arith.divf %12, %19 : vector<1x8xf32>
    %cst_15 = arith.constant 1.250000e-01 : f32
    %21 = vector.shape_cast %16 : vector<1x1xi1> to vector<1x1xi1>
    %22 = vector.broadcast %21 : vector<1x1xi1> to vector<1x8xi1>
    %23 = vector.broadcast %cst_15 : f32 to vector<1x8xf32>
    %24 = arith.select %22, %20, %23 : vector<1x8xi1>, vector<1x8xf32>
    %cst_16 = arith.constant dense<0.000000e+00> : vector<1x32xf32>
    %25 = tpu.matmul %24, %6, %cst_16 {dimension_numbers = #tpu.dot_dimension_numbers<[1], [0], [0], [1], [0, 0, 1, 1], [], []>} : vector<1x8xf32>, vector<8x32xf32>, vector<1x32xf32> -> vector<1x32xf32>
    %c0_17 = arith.constant 0 : index
    %c0_18 = arith.constant 0 : index
    %c0_19 = arith.constant 0 : index
    %26 = vector.load %arg10[%c0_17, %c0_18, %c0_19] : memref<2x1x32xf32, #tpu.memory_space<vmem>>, vector<1x1x32xf32>
    %27 = vector.shape_cast %26 : vector<1x1x32xf32> to vector<1x32xf32>
    %28 = vector.shape_cast %25 : vector<1x32xf32> to vector<1x1x32xf32>
    tpu.vector_store %arg10[%c0_17, %c0_18, %c0_19], %28 {strides = array<i32>} : memref<2x1x32xf32, #tpu.memory_space<vmem>>, vector<1x1x32xf32>,
    %cst_20 = arith.constant dense<0.000000e+00> : vector<1x4xf32>
    %29 = tpu.matmul %25, %0, %cst_20 {dimension_numbers = #tpu.dot_dimension_numbers<[1], [1], [0], [0], [0, 0, 1, 0], [], []>} : vector<1x32xf32>, vector<4x32xf32>, vector<1x4xf32> -> vector<1x4xf32>
    %30 = arith.addf %29, %2 : vector<1x4xf32>
    %c0_21 = arith.constant 0 : index
    %c0_22 = arith.constant 0 : index
    %c0_23 = arith.constant 0 : index
    %31 = vector.load %arg11[%c0_21, %c0_22, %c0_23] : memref<2x1x4xf32, #tpu.memory_space<vmem>>, vector<1x1x4xf32>
    %32 = vector.shape_cast %31 : vector<1x1x4xf32> to vector<1x4xf32>
    %33 = vector.shape_cast %30 : vector<1x4xf32> to vector<1x1x4xf32>
    tpu.vector_store %arg11[%c0_21, %c0_22, %c0_23], %33 {strides = array<i32>} : memref<2x1x4xf32, #tpu.memory_space<vmem>>, vector<1x1x4xf32>,
    %cst_24 = arith.constant dense<0.000000e+00> : vector<4x8xf32>
    %34 = tpu.matmul %1, %6, %cst_24 {dimension_numbers = #tpu.dot_dimension_numbers<[1], [1], [0], [0], [0, 0, 1, 0], [], []>} : vector<4x32xf32>, vector<8x32xf32>, vector<4x8xf32> -> vector<4x8xf32>
    %35 = vector.broadcast %3 : vector<4x1xf32> to vector<4x8xf32>
    %36 = arith.addf %34, %35 : vector<4x8xf32>
    %c0_25 = arith.constant 0 : index
    %c0_26 = arith.constant 0 : index
    %c0_27 = arith.constant 0 : index
    %37 = vector.load %arg12[%c0_25, %c0_26, %c0_27] : memref<2x4x8xf32, #tpu.memory_space<vmem>>, vector<1x4x8xf32>
    %38 = vector.shape_cast %37 : vector<1x4x8xf32> to vector<4x8xf32>
    %39 = vector.shape_cast %36 : vector<4x8xf32> to vector<1x4x8xf32>
    tpu.vector_store %arg12[%c0_25, %c0_26, %c0_27], %39 {strides = array<i32>} : memref<2x4x8xf32, #tpu.memory_space<vmem>>, vector<1x4x8xf32>,
    %c1 = arith.constant 1 : index
    %c0_28 = arith.constant 0 : index
    %c0_29 = arith.constant 0 : index
    %40 = vector.load %arg2[%c1, %c0_28, %c0_29] : memref<2x8x32xbf16, #tpu.memory_space<vmem>>, vector<1x8x32xbf16>
    %41 = vector.shape_cast %40 : vector<1x8x32xbf16> to vector<8x32xbf16>
    %42 = arith.extf %41 : vector<8x32xbf16> to vector<8x32xf32>
    %c1_30 = arith.constant 1 : index
    %c0_31 = arith.constant 0 : index
    %c0_32 = arith.constant 0 : index
    %43 = vector.load %arg1[%c1_30, %c0_31, %c0_32] : memref<2x1x8xi32, #tpu.memory_space<vmem>>, vector<1x1x8xi32>
    %44 = vector.shape_cast %43 : vector<1x1x8xi32> to vector<1x8xi32>
    %c0_i32_33 = arith.constant 0 : i32
    %45 = vector.broadcast %c0_i32_33 : i32 to vector<1x8xi32>
    %46 = arith.cmpi ne, %44, %45 : vector<1x8xi32>
    %47 = arith.extui %46 : vector<1x8xi1> to vector<1x8xi32>
    %48 = arith.sitofp %47 : vector<1x8xi32> to vector<1x8xf32>
    %cst_34 = arith.constant dense<0.000000e+00> : vector<1xf32>
    %49 = vector.multi_reduction <add>, %48, %cst_34 [1] : vector<1x8xf32> to vector<1xf32>
    %50 = vector.shape_cast %49 : vector<1xf32> to vector<1x1xf32>
    %cst_35 = arith.constant 0.000000e+00 : f32
    %51 = vector.broadcast %cst_35 : f32 to vector<1x1xf32>
    %52 = arith.cmpf ogt, %50, %51 : vector<1x1xf32>
    %cst_36 = arith.constant 1.000000e+00 : f32
    %53 = vector.broadcast %cst_36 : f32 to vector<1x1xf32>
    %54 = arith.maximumf %50, %53 : vector<1x1xf32>
    %55 = vector.broadcast %54 : vector<1x1xf32> to vector<1x8xf32>
    %56 = arith.divf %48, %55 : vector<1x8xf32>
    %cst_37 = arith.constant 1.250000e-01 : f32
    %57 = vector.shape_cast %52 : vector<1x1xi1> to vector<1x1xi1>
    %58 = vector.broadcast %57 : vector<1x1xi1> to vector<1x8xi1>
    %59 = vector.broadcast %cst_37 : f32 to vector<1x8xf32>
    %60 = arith.select %58, %56, %59 : vector<1x8xi1>, vector<1x8xf32>
    %cst_38 = arith.constant dense<0.000000e+00> : vector<1x32xf32>
    %61 = tpu.matmul %60, %42, %cst_38 {dimension_numbers = #tpu.dot_dimension_numbers<[1], [0], [0], [1], [0, 0, 1, 1], [], []>} : vector<1x8xf32>, vector<8x32xf32>, vector<1x32xf32> -> vector<1x32xf32>
    %c1_39 = arith.constant 1 : index
    %c0_40 = arith.constant 0 : index
    %c0_41 = arith.constant 0 : index
    %62 = vector.load %arg10[%c1_39, %c0_40, %c0_41] : memref<2x1x32xf32, #tpu.memory_space<vmem>>, vector<1x1x32xf32>
    %63 = vector.shape_cast %62 : vector<1x1x32xf32> to vector<1x32xf32>
    %64 = vector.shape_cast %61 : vector<1x32xf32> to vector<1x1x32xf32>
    tpu.vector_store %arg10[%c1_39, %c0_40, %c0_41], %64 {strides = array<i32>} : memref<2x1x32xf32, #tpu.memory_space<vmem>>, vector<1x1x32xf32>,
    %cst_42 = arith.constant dense<0.000000e+00> : vector<1x4xf32>
    %65 = tpu.matmul %61, %0, %cst_42 {dimension_numbers = #tpu.dot_dimension_numbers<[1], [1], [0], [0], [0, 0, 1, 0], [], []>} : vector<1x32xf32>, vector<4x32xf32>, vector<1x4xf32> -> vector<1x4xf32>
    %66 = arith.addf %65, %2 : vector<1x4xf32>
    %c1_43 = arith.constant 1 : index
    %c0_44 = arith.constant 0 : index
    %c0_45 = arith.constant 0 : index
    %67 = vector.load %arg11[%c1_43, %c0_44, %c0_45] : memref<2x1x4xf32, #tpu.memory_space<vmem>>, vector<1x1x4xf32>
    %68 = vector.shape_cast %67 : vector<1x1x4xf32> to vector<1x4xf32>
    %69 = vector.shape_cast %66 : vector<1x4xf32> to vector<1x1x4xf32>
    tpu.vector_store %arg11[%c1_43, %c0_44, %c0_45], %69 {strides = array<i32>} : memref<2x1x4xf32, #tpu.memory_space<vmem>>, vector<1x1x4xf32>,
    %cst_46 = arith.constant dense<0.000000e+00> : vector<4x8xf32>
    %70 = tpu.matmul %1, %42, %cst_46 {dimension_numbers = #tpu.dot_dimension_numbers<[1], [1], [0], [0], [0, 0, 1, 0], [], []>} : vector<4x32xf32>, vector<8x32xf32>, vector<4x8xf32> -> vector<4x8xf32>
    %71 = vector.broadcast %3 : vector<4x1xf32> to vector<4x8xf32>
    %72 = arith.addf %70, %71 : vector<4x8xf32>
    %c1_47 = arith.constant 1 : index
    %c0_48 = arith.constant 0 : index
    %c0_49 = arith.constant 0 : index
    %73 = vector.load %arg12[%c1_47, %c0_48, %c0_49] : memref<2x4x8xf32, #tpu.memory_space<vmem>>, vector<1x4x8xf32>
    %74 = vector.shape_cast %73 : vector<1x4x8xf32> to vector<4x8xf32>
    %75 = vector.shape_cast %72 : vector<4x8xf32> to vector<1x4x8xf32>
    tpu.vector_store %arg12[%c1_47, %c0_48, %c0_49], %75 {strides = array<i32>} : memref<2x4x8xf32, #tpu.memory_space<vmem>>, vector<1x4x8xf32>,
    %c0_50 = arith.constant 0 : index
    %c0_51 = arith.constant 0 : index
    %c0_52 = arith.constant 0 : index
    %76 = vector.load %arg3[%c0_50, %c0_51, %c0_52] : memref<2x8x32xbf16, #tpu.memory_space<vmem>>, vector<2x8x32xbf16>
    %77 = arith.extf %76 : vector<2x8x32xbf16> to vector<2x8x32xf32>
    %cst_53 = arith.constant 2.000000e-01 : f32
    %78 = vector.broadcast %cst_53 : f32 to vector<2x8x32xf32>
    %79 = arith.mulf %77, %78 : vector<2x8x32xf32>
    %c0_54 = arith.constant 0 : index
    %c0_55 = arith.constant 0 : index
    %c0_56 = arith.constant 0 : index
    %80 = vector.load %arg4[%c0_54, %c0_55, %c0_56] : memref<2x8x32xbf16, #tpu.memory_space<vmem>>, vector<2x8x32xbf16>
    %81 = arith.extf %80 : vector<2x8x32xbf16> to vector<2x8x32xf32>
    %cst_57 = arith.constant 3.000000e-01 : f32
    %82 = vector.broadcast %cst_57 : f32 to vector<2x8x32xf32>
    %83 = arith.mulf %81, %82 : vector<2x8x32xf32>
    %84 = arith.addf %79, %83 : vector<2x8x32xf32>
    %c0_58 = arith.constant 0 : index
    %c0_59 = arith.constant 0 : index
    %c0_60 = arith.constant 0 : index
    %85 = vector.load %arg5[%c0_58, %c0_59, %c0_60] : memref<2x8x32xbf16, #tpu.memory_space<vmem>>, vector<2x8x32xbf16>
    %86 = arith.extf %85 : vector<2x8x32xbf16> to vector<2x8x32xf32>
    %cst_61 = arith.constant 5.000000e-01 : f32
    %87 = vector.broadcast %cst_61 : f32 to vector<2x8x32xf32>
    %88 = arith.mulf %86, %87 : vector<2x8x32xf32>
    %89 = arith.addf %84, %88 : vector<2x8x32xf32>
    %90 = arith.truncf %89 : vector<2x8x32xf32> to vector<2x8x32xbf16>
    %c0_62 = arith.constant 0 : index
    %c0_63 = arith.constant 0 : index
    %c0_64 = arith.constant 0 : index
    %91 = vector.load %arg13[%c0_62, %c0_63, %c0_64] : memref<2x8x32xbf16, #tpu.memory_space<vmem>>, vector<2x8x32xbf16>
    tpu.vector_store %arg13[%c0_62, %c0_63, %c0_64], %90 {strides = array<i32>} : memref<2x8x32xbf16, #tpu.memory_space<vmem>>, vector<2x8x32xbf16>,
    return
  }
  func.func @transform_0(%arg0: i32) -> (i32, i32, i32) {
    %c0_i32 = arith.constant 0 : i32
    %c0_i32_0 = arith.constant 0 : i32
    %c0_i32_1 = arith.constant 0 : i32
    return %arg0, %c0_i32, %c0_i32_0 : i32, i32, i32
  }
  func.func @transform_1(%arg0: i32) -> (i32, i32, i32) {
    %c0_i32 = arith.constant 0 : i32
    %c0_i32_0 = arith.constant 0 : i32
    %c0_i32_1 = arith.constant 0 : i32
    return %arg0, %c0_i32, %c0_i32_0 : i32, i32, i32
  }
  func.func @transform_2(%arg0: i32) -> (i32, i32, i32) {
    %c0_i32 = arith.constant 0 : i32
    %c0_i32_0 = arith.constant 0 : i32
    %c0_i32_1 = arith.constant 0 : i32
    return %arg0, %c0_i32, %c0_i32_0 : i32, i32, i32
  }
  func.func @transform_3(%arg0: i32) -> (i32, i32, i32) {
    %c0_i32 = arith.constant 0 : i32
    %c0_i32_0 = arith.constant 0 : i32
    %c0_i32_1 = arith.constant 0 : i32
    return %arg0, %c0_i32, %c0_i32_0 : i32, i32, i32
  }
  func.func @transform_4(%arg0: i32) -> (i32, i32, i32) {
    %c0_i32 = arith.constant 0 : i32
    %c0_i32_0 = arith.constant 0 : i32
    %c0_i32_1 = arith.constant 0 : i32
    return %arg0, %c0_i32, %c0_i32_0 : i32, i32, i32
  }
  func.func @transform_5(%arg0: i32) -> (i32, i32) {
    %c0_i32 = arith.constant 0 : i32
    %c0_i32_0 = arith.constant 0 : i32
    %c0_i32_1 = arith.constant 0 : i32
    return %c0_i32, %c0_i32_0 : i32, i32
  }
  func.func @transform_6(%arg0: i32) -> (i32, i32) {
    %c0_i32 = arith.constant 0 : i32
    %c0_i32_0 = arith.constant 0 : i32
    %c0_i32_1 = arith.constant 0 : i32
    return %c0_i32, %c0_i32_0 : i32, i32
  }
  func.func @transform_7(%arg0: i32) -> (i32, i32) {
    %c0_i32 = arith.constant 0 : i32
    %c0_i32_0 = arith.constant 0 : i32
    %c0_i32_1 = arith.constant 0 : i32
    return %c0_i32, %c0_i32_0 : i32, i32
  }
  func.func @transform_8(%arg0: i32) -> (i32, i32) {
    %c0_i32 = arith.constant 0 : i32
    %c0_i32_0 = arith.constant 0 : i32
    %c0_i32_1 = arith.constant 0 : i32
    return %c0_i32, %c0_i32_0 : i32, i32
  }
  func.func @transform_9(%arg0: i32) -> (i32, i32, i32) {
    %c0_i32 = arith.constant 0 : i32
    %c0_i32_0 = arith.constant 0 : i32
    %c0_i32_1 = arith.constant 0 : i32
    return %arg0, %c0_i32, %c0_i32_0 : i32, i32, i32
  }
  func.func @transform_10(%arg0: i32) -> (i32, i32, i32) {
    %c0_i32 = arith.constant 0 : i32
    %c0_i32_0 = arith.constant 0 : i32
    %c0_i32_1 = arith.constant 0 : i32
    return %arg0, %c0_i32, %c0_i32_0 : i32, i32, i32
  }
  func.func @transform_11(%arg0: i32) -> (i32, i32, i32) {
    %c0_i32 = arith.constant 0 : i32
    %c0_i32_0 = arith.constant 0 : i32
    %c0_i32_1 = arith.constant 0 : i32
    return %arg0, %c0_i32, %c0_i32_0 : i32, i32, i32
  }
  func.func @transform_12(%arg0: i32) -> (i32, i32, i32) {
    %c0_i32 = arith.constant 0 : i32
    %c0_i32_0 = arith.constant 0 : i32
    %c0_i32_1 = arith.constant 0 : i32
    return %arg0, %c0_i32, %c0_i32_0 : i32, i32, i32
  }
}

</mosaic_0001>

<bundles_post_ra>
// kernel: tpu_custom_call.1
= control target key start
LH: loop header
LB: loop body
LE: loop exit
PB: predicated region body
PF: predicated region fallthrough
CT: control target
= control target key end

     0   :  { %18 = vsyncpa [#allocation3], 0  ;;  %s1162_s0 = inlined_call_operand.hbm [shape: s32[2,1,8], index: 0, kind: input, shape index: {}]   ;;  %s1163_s1 = inlined_call_operand.vmem [shape: bf16[2,8,32], index: 1, kind: input, shape index: {}]   ;;  %s1164_s2 = inlined_call_operand.hbm [shape: bf16[2,8,32], index: 2, kind: input, shape index: {}]   ;;  %s1165_s3 = inlined_call_operand.vmem [shape: bf16[2,8,32], index: 3, kind: input, shape index: {}]   ;;  %s1166_s4 = inlined_call_operand.hbm [shape: bf16[2,8,32], index: 4, kind: input, shape index: {}]   ;;  %s1167_s5 = inlined_call_operand.vmem [shape: f32[4,32], index: 5, kind: input, shape index: {}]   ;;  %s1168_s6 = inlined_call_operand.vmem [shape: f32[1,4], index: 6, kind: input, shape index: {}]   ;;  %s1169_s7 = inlined_call_operand.vmem [shape: f32[4,32], index: 7, kind: input, shape index: {}]   ;;  %s1170_s8 = inlined_call_operand.vmem [shape: f32[4,1], index: 8, kind: input, shape index: {}]   ;;  %s1171_s9 = inlined_call_operand.hbm [shape: f32[2,1,32], index: 9, kind: output, shape index: {0}]   ;;  %s1172_s10 = inlined_call_operand.hbm [shape: f32[2,1,4], index: 10, kind: output, shape index: {1}]   ;;  %s1173_s11 = inlined_call_operand.hbm [shape: f32[2,4,8], index: 11, kind: output, shape index: {2}]   ;;  %s1174_s12 = inlined_call_operand.hbm [shape: bf16[2,8,32], index: 12, kind: output, shape index: {3}]  }
   0x1   :  { %19 = vsyncpa [#allocation6], 0 }
   0x2   :  { %20 = vsyncpa [#allocation4], 0 }
   0x3   :  { %21 = vsyncpa [#allocation10], 0 }
   0x4   :  { %22 = vsyncpa [#allocation13], 0  ;;  %s925_s21 = smov [#allocation5]   ;;  %s761_s25 = scalar_lea.hbm %s1164_s2, 128 }
   0x5   :  { %s42_s22 = sshll.u32 %s925_s21, 4  ;;  %p762_p0 = scmp.ne.s32.totalorder %s1164_s2, %s761_s25  ;;  %s43_s22 = int_to_ptr.vmem [resolvable:$true] %s42_s22 }
   0x6   :  { %p765_p1 = scmp.lt.u32.totalorder %s761_s25, %s1164_s2 }
   0x8   :  { %p767_p2 = pnand %p765_p1, %p762_p0 }
   0xa   :  { %770 = shalt.err (!%p767_p2)
}
   0xb   :  { %s771_s30 = scalar_lea.vmem %s43_s22, 128  ;;  %p776_p4 = scmp.lt.s32.totalorder %s43_s22, %s43_s22 }
   0xc   :  { %p772_p3 = scmp.ne.s32.totalorder %s43_s22, %s771_s30  ;;  %p777_p5 = scmp.lt.s32.totalorder %s771_s30, %s771_s30 }
   0xe   :  { %p778_p6 = por %p777_p5, %p776_p4 }
  0x10   :  { %p779_p7 = pnand %p778_p6, %p772_p3 }
  0x12   :  { %782 = shalt.err (!%p779_p7)
}
  0x13   :  { %s926_s13 = smov 64   ;;  %s927_s14 = smov 4  }
  0x14   :  { %48 = dma.hbm_to_vmem [thread:$0]  %s1164_s2, 128, %s43_s22, [#allocation6], %s926_s13, %s926_s13, %s927_s14  }
  0x15   :  { %s928_s17 = smov [#allocation2]   ;;  %s783_s21 = scalar_lea.hbm %s1162_s0, 32 }
  0x16   :  { %s28_s18 = sshll.u32 %s928_s17, 4  ;;  %p784_p8 = scmp.ne.s32.totalorder %s1162_s0, %s783_s21  ;;  %s29_s18 = int_to_ptr.vmem [resolvable:$true] %s28_s18 }
  0x17   :  { %p787_p9 = scmp.lt.u32.totalorder %s783_s21, %s1162_s0 }
  0x19   :  { %p789_p10 = pnand %p787_p9, %p784_p8 }
  0x1b   :  { %792 = shalt.err (!%p789_p10)
}
  0x1c   :  { %s793_s27 = scalar_lea.vmem %s29_s18, 32  ;;  %p798_p12 = scmp.lt.s32.totalorder %s29_s18, %s29_s18 }
  0x1d   :  { %p794_p11 = scmp.ne.s32.totalorder %s29_s18, %s793_s27  ;;  %p799_p13 = scmp.lt.s32.totalorder %s793_s27, %s793_s27 }
  0x1f   :  { %p800_p0 = por %p799_p13, %p798_p12 }
  0x21   :  { %p801_p1 = pnand %p800_p0, %p794_p11 }
  0x23   :  { %804 = shalt.err (!%p801_p1)
}
  0x24   :  { %s929_s2 = smov 16   ;;  %s930_s22 = smov 1  }
  0x25   :  { %34 = dma.hbm_to_vmem [thread:$0]  %s1162_s0, 32, %s29_s18, [#allocation3], %s929_s2, %s929_s2, %s930_s22  }
  0x26   :  { %s931_s30 = smov [#allocation7]   ;;  %s805_s19 = scalar_lea.hbm %s1166_s4, 128 }
  0x27   :  { %s56_s15 = sshll.u32 %s931_s30, 4  ;;  %p806_p2 = scmp.ne.s32.totalorder %s1166_s4, %s805_s19  ;;  %s57_s15 = int_to_ptr.vmem [resolvable:$true] %s56_s15 }
  0x28   :  { %p809_p3 = scmp.lt.u32.totalorder %s805_s19, %s1166_s4 }
  0x2a   :  { %p811_p4 = pnand %p809_p3, %p806_p2 }
  0x2c   :  { %814 = shalt.err (!%p811_p4)
}
  0x2d   :  { %s815_s25 = scalar_lea.vmem %s57_s15, 128  ;;  %p820_p6 = scmp.lt.s32.totalorder %s57_s15, %s57_s15 }
  0x2e   :  { %p816_p5 = scmp.ne.s32.totalorder %s57_s15, %s815_s25  ;;  %p821_p7 = scmp.lt.s32.totalorder %s815_s25, %s815_s25 }
  0x30   :  { %p822_p8 = por %p821_p7, %p820_p6 }
  0x32   :  { %p823_p9 = pnand %p822_p8, %p816_p5 }
  0x34   :  { %826 = shalt.err (!%p823_p9)
}
  0x35   :  { %62 = dma.hbm_to_vmem [thread:$0]  %s1166_s4, 128, %s57_s15, [#allocation6], %s926_s13, %s926_s13, %s927_s14  }
  0x36   :  { %915 = dma.done.wait [#allocation3], 32  }
  0x37   :  { %916 = vsyncadd [#allocation3], 4294967264 }
  0x38   :  { %917 = dma.done.wait [#allocation6], 256  }
  0x39   :  { %918 = vsyncadd [#allocation6], 4294967040  ;;  %v932_v0 = vmov 0.0   ;;  %v86_v1 = vld [vmem:[#allocation2] sm:$0x1]  ;;  %vm90_vm0 = vcmask 57344  }
  0x3a   :  { %711 = vmatprep.subr.mxu0 %v932_v0  ;;  %716 = vmatprep.subr.mxu1 %v932_v0  ;;  %vm87_vm1 = vcmp.ne.s32.totalorder %v86_v1, 0  ;;  %v84_v4 = vld [vmem:[%s1163_s1] sm:$0xff]   ;;  %vm933_vm2 = vmmov 0   ;;  %vm177_vm4 = vcmask 261120   ;;  %vm101_vm5 = vcmask 64512   ;;  %v696_v40 = vld [vmem:[#allocation7] sm:$0xff]  }
  0x3b   :  { %v674_v2 = vsel %vm87_vm1, 1.0, %v932_v0  ;;  %v85_v5 = vunpack.c.l.bf16 %v84_v4  ;;  %713 = vmatprep.mubr.msk.f32.mxu0 %vm933_vm2, %v932_v0  ;;  %v343_v6 = vld [vmem:[#allocation2 + $0x1] sm:$0x1]  ;;  %718 = vmatprep.mubr.msk.f32.mxu1 %vm933_vm2, %v932_v0  ;;  %vm175_vm7 = vcmask 253952   ;;  %v341_v18 = vunpack.c.h.bf16 %v84_v4  ;;  %v1080_v26 = vld [vmem:[%s1168_s6] sm:$0x1] }
  0x3c   :  { %v91_v3 = vsel %vm90_vm0, %v674_v2, 0.0  ;;  %vm344_vm3 = vcmp.ne.s32.totalorder %v343_v6, 0  ;;  %v80_v9 = vld [vmem:[%s1167_s5] sm:$0xf]  ;;  %v934_v25 = vmov 0   ;;  %vm254_vm9 = vcmask 24576  }
  0x3d   :  { %92 = vadd.xlane.f32.xlu0 %v91_v3  ;;  %712 = vmatpush3.msra.mxu0 %v85_v5  ;;  %v681_v7 = vsel %vm344_vm3, 1.0, %v932_v0  ;;  %v81_v23 = vld [vmem:[%s1169_s7] sm:$0xf]  ;;  %vm337_vm10 = vcmask 60416   ;;  %v697_v45 = vunpack.c.l.bf16 %v696_v40  ;;  %v698_v48 = vunpack.c.h.bf16 %v696_v40 }
  0x3e   :  { %721 = vmatprep.subr.mxu0 %v932_v0  ;;  %v347_v8 = vsel %vm90_vm0, %v681_v7, 0.0  ;;  %717 = vmatpush3.xpose.msk.msra.mxu1 %vm177_vm4, %v80_v9  ;;  %v83_v24 = vld [vmem:[%s1170_s8] sm:$0xf]  ;;  %vm606_vm11 = vcmask 257024  }
  0x3f   :  { %726 = vmatprep.subr.mxu1 %v932_v0  ;;  %755 = vset.pattern.permute.xlu1 %v934_v25  ;;  %v688_v33 = vld [vmem:[#allocation5] sm:$0xff]   ;;  %v600_v49 = vmul.f32 0.5, %v697_v45  ;;  %v601_v52 = vmul.f32 0.5, %v698_v48 }
  0x40   :  { %756 = vset.pattern.permute.xlu0 %v934_v25  ;;  %258 = vperm.xlu1 %755, %v83_v24   ;;  %v692_v34 = vld [vmem:[%s1165_s3] sm:$0xff]   ;;  %v689_v35 = vunpack.c.l.bf16 %v688_v33  ;;  %v690_v36 = vunpack.c.h.bf16 %v688_v33  ;;  %s935_s3 = smov [#allocation8]  }
  0x41   :  { %348 = vadd.xlane.f32.xlu0 %v347_v8  ;;  %v693_v37 = vunpack.c.l.bf16 %v692_v34  ;;  %v694_v38 = vunpack.c.h.bf16 %v692_v34  ;;  %s614_s6 = sshll.u32 %s935_s3, 4  ;;  %s615_s6 = int_to_ptr.vmem [resolvable:$true] %s614_s6 }
  0x42   :  { %v586_v43 = vmul.f32 0.2, %v689_v35  ;;  %v587_v44 = vmul.f32 0.2, %v690_v36  ;;  %s827_s17 = scalar_lea.vmem %s615_s6, 32  ;;  %p832_p11 = scmp.lt.s32.totalorder %s615_s6, %s615_s6 }
  0x43   :  { %v592_v46 = vmul.f32 0.3, %v693_v37  ;;  %v593_v47 = vmul.f32 0.3, %v694_v38  ;;  %p828_p10 = scmp.ne.s32.totalorder %s615_s6, %s827_s17  ;;  %p833_p12 = scmp.lt.s32.totalorder %s827_s17, %s827_s17 }
  0x45   :  { %v594_v50 = vadd.f32 %v592_v46, %v586_v43  ;;  %v595_v51 = vadd.f32 %v593_v47, %v587_v44  ;;  %p834_p13 = por %p833_p12, %p832_p11 }
  0x47   :  { %v602_v56 = vadd.f32 %v600_v49, %v594_v50  ;;  %v603_v57 = vadd.f32 %v601_v52, %v595_v51  ;;  %p835_p0 = pnand %p834_p13, %p828_p10 }
  0x49   :  { %v604_v58 = vpack.c.bf16 %v602_v56, %v602_v56  ;;  %v605_v59 = vpack.c.bf16 %v603_v57, %v603_v57 }
  0xbf   :  { %v259_v32 = vpop.permute.xlu1 %258 }
  0xca   :  { %v93_v10 = vpop.xlane.xlu0 %92 }
  0xcb   :  { %v95_v11 = vmax.f32 %v93_v10, 1.0  ;;  %vm94_vm6 = vcmp.gt.f32.partialorder %v93_v10, 0.0 }
  0xcd   :  { %757 = vrcp.f32 %v95_v11 }
  0xce   :  { %v349_v15 = vpop.xlane.xlu0 %348 }
  0xcf   :  { %v351_v16 = vmax.f32 %v349_v15, 1.0  ;;  %vm350_vm8 = vcmp.gt.f32.partialorder %v349_v15, 0.0 }
  0xd1   :  { %759 = vrcp.f32 %v351_v16 }
  0xd7   :  { %v758_v12 = vpop.eup %757 }
  0xd8   :  { %v97_v13 = vmul.f32 %v758_v12, %v674_v2 }
  0xda   :  { %v100_v14 = vsel %vm94_vm6, %v97_v13, 0.125 }
  0xdb   :  { %714 = vmatmul.mubr.msk.f32.vlgmr.msra.gmra.mrb[0].mxu0 %vm101_vm5, %v100_v14  ;;  %v760_v17 = vpop.eup %759 }
  0xdc   :  { %722 = vmatpush3.xpose.msk.msra.mxu0 %vm177_vm4, %v85_v5  ;;  %723 = vmatprep.mubr.msk.f32.mxu0 %vm933_vm2, %v932_v0  ;;  %v353_v19 = vmul.f32 %v760_v17, %v681_v7 }
  0xdd   :  { %731 = vmatprep.subr.mxu0 %v932_v0 }
  0xde   :  { %v356_v22 = vsel %vm350_vm8, %v353_v19, 0.125 }
  0xdf   :  { %724 = vmatmul.mubr.msk.f32.vlgmr.msra.gmra.mrb[2].mxu0 %vm177_vm4, %v81_v23 }
  0xe0   :  { %732 = vmatpush3.xpose.msk.msra.mxu0 %vm177_vm4, %v80_v9  ;;  %733 = vmatprep.mubr.msk.f32.mxu0 %vm933_vm2, %v932_v0 }
 0x1ae   :  { %v171_v20 = vpop.f32.mrb[0].mxu0 }
 0x1af   :  { %176 = vst.msk [vmem:[#allocation8] sm:$0x1] %vm175_vm7, %v171_v20  ;;  %v715_v21 = vpop.f32.mrb[1].mxu0  ;;  %719 = vmatmul.mubr.msk.f32.vlgmr.msra.gmra.mrb[0].mxu1 %vm177_vm4, %v171_v20 }
 0x1b0   :  { %727 = vmatpush3.msra.mxu1 %v341_v18  ;;  %728 = vmatprep.mubr.msk.f32.mxu1 %vm933_vm2, %v932_v0 }
 0x1b1   :  { %736 = vmatprep.subr.mxu1 %v932_v0 }
 0x1b2   :  { %v333_v39 = vpop.f32.mrb[2].mxu0 }
 0x1b3   :  { %729 = vmatmul.mubr.msk.f32.vlgmr.msra.gmra.mrb[2].mxu1 %vm101_vm5, %v356_v22  ;;  %v334_v41 = vadd.f32 %v333_v39, %v259_v32  ;;  %v725_v42 = vpop.f32.mrb[3].mxu0 }
 0x1b4   :  { %738 = vmatprep.mubr.msk.f32.mxu1 %vm933_vm2, %v932_v0 }
 0x1b5   :  { %338 = vst.msk [vmem:[#allocation11] sm:$0xf] %vm337_vm10, %v334_v41 }
 0x1b7   :  { %737 = vmatpush3.xpose.msk.msra.mxu1 %vm177_vm4, %v341_v18 }
 0x1ba   :  { %739 = vmatmul.mubr.msk.f32.vlgmr.msra.gmra.mrb[4].mxu1 %vm177_vm4, %v81_v23 }
 0x282   :  { %v250_v27 = vpop.f32.mrb[0].mxu1 }
 0x283   :  { %v251_v28 = vadd.f32 %v250_v27, %v1080_v26  ;;  %v720_v29 = vpop.f32.mrb[1].mxu1 }
 0x285   :  { %255 = vst.msk [vmem:[#allocation9] sm:$0x1] %vm254_vm9, %v251_v28 }
 0x286   :  { %v426_v30 = vpop.f32.mrb[2].mxu1 }
 0x287   :  { %431 = vst.msk [vmem:[#allocation8 + $0x1] sm:$0x1] %vm175_vm7, %v426_v30  ;;  %v730_v31 = vpop.f32.mrb[3].mxu1  ;;  %734 = vmatmul.mubr.msk.f32.vlgmr.msra.gmra.mrb[4].mxu0 %vm177_vm4, %v426_v30 }
 0x28d   :  { %v576_v53 = vpop.f32.mrb[4].mxu1 }
 0x28e   :  { %v577_v54 = vadd.f32 %v576_v53, %v259_v32  ;;  %v740_v55 = vpop.f32.mrb[5].mxu1 }
 0x290   :  { %581 = vst.msk [vmem:[#allocation11 + $0x4] sm:$0xf] %vm337_vm10, %v577_v54 }
 0x291   :  { %838 = shalt.err (!%p835_p0)
}
 0x292   :  { %s839_s21 = scalar_lea.hbm %s1171_s9, 32 }
 0x293   :  { %p840_p1 = scmp.ne.s32.totalorder %s1171_s9, %s839_s21  ;;  %p843_p2 = scmp.lt.u32.totalorder %s839_s21, %s1171_s9 }
 0x295   :  { %p845_p3 = pnand %p843_p2, %p840_p1 }
 0x297   :  { %848 = shalt.err (!%p845_p3)
}
 0x298   :  { %620 = dma.vmem_to_hbm [thread:$0]  %s615_s6, 32, %s1171_s9, [#allocation4], %s929_s2, %s929_s2, %s930_s22   ;;  %607 = vst.msk [vmem:[#allocation12] sm:$0xf] %vm606_vm11, %v604_v58  ;;  %608 = vst.msk [vmem:[#allocation12 + $0x4] sm:$0xf] %vm606_vm11, %v605_v59 }
 0x299   :  { %s936_s27 = smov [#allocation12]  }
 0x29a   :  { %s650_s4 = sshll.u32 %s936_s27, 4  ;;  %s651_s4 = int_to_ptr.vmem [resolvable:$true] %s650_s4 }
 0x29b   :  { %s849_s28 = scalar_lea.vmem %s651_s4, 128  ;;  %p854_p5 = scmp.lt.s32.totalorder %s651_s4, %s651_s4 }
 0x29c   :  { %p850_p4 = scmp.ne.s32.totalorder %s651_s4, %s849_s28  ;;  %p855_p6 = scmp.lt.s32.totalorder %s849_s28, %s849_s28 }
 0x29e   :  { %p856_p7 = por %p855_p6, %p854_p5 }
 0x2a0   :  { %p857_p8 = pnand %p856_p7, %p850_p4 }
 0x2a2   :  { %860 = shalt.err (!%p857_p8)
}
 0x2a3   :  { %s861_s29 = scalar_lea.hbm %s1174_s12, 128 }
 0x2a4   :  { %p862_p9 = scmp.ne.s32.totalorder %s1174_s12, %s861_s29  ;;  %p865_p10 = scmp.lt.u32.totalorder %s861_s29, %s1174_s12 }
 0x2a6   :  { %p867_p11 = pnand %p865_p10, %p862_p9 }
 0x2a8   :  { %870 = shalt.err (!%p867_p11)
}
 0x2a9   :  { %656 = dma.vmem_to_hbm [thread:$0]  %s651_s4, 128, %s1174_s12, [#allocation13], %s926_s13, %s926_s13, %s927_s14  }
 0x2aa   :  { %s937_s3 = smov [#allocation9]   ;;  %s938_s17 = smov [#allocation11]  }
 0x2ab   :  { %s626_s6 = sshll.u32 %s937_s3, 4  ;;  %s638_s19 = sshll.u32 %s938_s17, 4  ;;  %s627_s6 = int_to_ptr.vmem [resolvable:$true] %s626_s6  ;;  %s1124_s19 = int_to_ptr.vmem [resolvable:$true] %s638_s19 }
 0x2ac   :  { %s871_s20 = scalar_lea.vmem %s627_s6, 32  ;;  %p876_p13 = scmp.lt.s32.totalorder %s627_s6, %s627_s6 }
 0x2ad   :  { %p872_p12 = scmp.ne.s32.totalorder %s627_s6, %s871_s20  ;;  %p877_p0 = scmp.lt.s32.totalorder %s871_s20, %s871_s20 }
 0x2af   :  { %p878_p1 = por %p877_p0, %p876_p13 }
 0x2b1   :  { %p879_p2 = pnand %p878_p1, %p872_p12 }
 0x35a   :  { %v501_v60 = vpop.f32.mrb[4].mxu0 }
 0x35b   :  { %v502_v61 = vadd.f32 %v501_v60, %v1080_v26  ;;  %v735_v62 = vpop.f32.mrb[5].mxu0 }
 0x35d   :  { %506 = vst.msk [vmem:[#allocation9 + $0x1] sm:$0x1] %vm254_vm9, %v502_v61 }
 0x35e   :  { %882 = shalt.err (!%p879_p2)
}
 0x35f   :  { %s883_s23 = scalar_lea.hbm %s1172_s10, 32 }
 0x360   :  { %p884_p3 = scmp.ne.s32.totalorder %s1172_s10, %s883_s23  ;;  %p887_p4 = scmp.lt.u32.totalorder %s883_s23, %s1172_s10 }
 0x362   :  { %p889_p5 = pnand %p887_p4, %p884_p3 }
 0x364   :  { %892 = shalt.err (!%p889_p5)
}
 0x365   :  { %632 = dma.vmem_to_hbm [thread:$0]  %s627_s6, 32, %s1172_s10, [#allocation10], %s929_s2, %s929_s2, %s930_s22  }
 0x366   :  { %s893_s4 = scalar_lea.vmem %s1124_s19, 128  ;;  %p898_p7 = scmp.lt.s32.totalorder %s1124_s19, %s1124_s19 }
 0x367   :  { %p894_p6 = scmp.ne.s32.totalorder %s1124_s19, %s893_s4  ;;  %p899_p8 = scmp.lt.s32.totalorder %s893_s4, %s893_s4 }
 0x369   :  { %p900_p9 = por %p899_p8, %p898_p7 }
 0x36b   :  { %p901_p10 = pnand %p900_p9, %p894_p6 }
 0x36d   :  { %904 = shalt.err (!%p901_p10)
}
 0x36e   :  { %s905_s5 = scalar_lea.hbm %s1173_s11, 128 }
 0x36f   :  { %p906_p11 = scmp.ne.s32.totalorder %s1173_s11, %s905_s5  ;;  %p909_p12 = scmp.lt.u32.totalorder %s905_s5, %s1173_s11 }
 0x371   :  { %p911_p13 = pnand %p909_p12, %p906_p11 }
 0x373   :  { %914 = shalt.err (!%p911_p13)
}
 0x374   :  { %644 = dma.vmem_to_hbm [thread:$0]  %s1124_s19, 128, %s1173_s11, [#allocation10], %s926_s13, %s926_s13, %s927_s14  }
 0x375   :  { %919 = dma.done.wait [#allocation4], 32  }
 0x376   :  { %920 = vsyncadd [#allocation4], 4294967264 }
 0x377   :  { %921 = dma.done.wait [#allocation10], 160  }
 0x378   :  { %922 = vsyncadd [#allocation10], 4294967136 }
 0x379   :  { %923 = dma.done.wait [#allocation13], 128  }
 0x37a   :  { %924 = vsyncadd [#allocation13], 4294967168 }
 0x37b   :  { %669 = vsyncpa [#allocation3], 1 }
 0x37c   :  { %670 = vsyncpa [#allocation6], 1 }
 0x37d   :  { %671 = vsyncpa [#allocation4], 1 }
 0x37e   :  { %672 = vsyncpa [#allocation10], 1 }
 0x37f   :  { %673 = vsyncpa [#allocation13], 1 }

</bundles_post_ra>
